<compile_context>
chip_gen: v6e
topology: v6e:2x2x1
jax: 0.10.0
libtpu: 0.0.40
codegen_flags: <defaults>
</compile_context>

<pallas_src>
import functools
import math

import jax
import jax.numpy as jnp
from jax.experimental import pallas as pl
from jax.experimental.pallas import tpu as pltpu


def _round_up(x, m):
    return (x + m - 1) // m * m


def _vmem_capacity_bytes():
    """Per-core VMEM capacity; conservative 64 MiB (v7x) if the query fails."""
    try:
        cap = int(pltpu.get_tpu_info().vmem_capacity_bytes)
        if cap > 0:
            return cap
    except Exception:
        pass
    return 64 * 1024 * 1024


def _choose_tiles(rows, dim, act_bytes, w_bytes, budget, tm_hint=None, tk_hint=None):
    """Pick (row tile, weight K/N chunk) from the VMEM budget."""
    sub = {4: 8, 2: 16, 1: 32}.get(act_bytes, 8)   # dtype-correct sublane multiple

    # K/N chunk of the weights: keep all three resident (single chunk) when
    # they fit in ~55% of the budget, otherwise stream 512/256/128-wide chunks
    # (prefer 256-multiples: v6e/v7x MXU is 256 wide).
    if tk_hint is not None and dim % tk_hint == 0:
        tk = tk_hint
    elif 3 * dim * dim * w_bytes <= int(0.55 * budget):
        tk = dim
    else:
        tk = dim
        for cand in (512, 256, 128):
            if dim % cand == 0:
                tk = cand
                break

    nbuf_w = 1 if tk == dim else 2
    w_foot = nbuf_w * (3 * dim * tk * w_bytes + tk * 4) + dim * 4

    # Row tile: as big as the remaining budget allows (capped at 1024 rows).
    per_row = (
        (2 * 2 + 2) * dim * act_bytes          # flow/time/out, double-buffered
        + dim * 4                              # f32 accumulator (streaming case)
        + (5 * max(tk, 128) + dim) * 4         # in-kernel f32 temporaries
    )
    rem = max(budget - w_foot, per_row * sub)
    tm_cap = max(sub, int(rem // per_row) // sub * sub)

    tm = tm_hint if tm_hint is not None else 1024
    tm = min(tm, tm_cap, _round_up(rows, sub))
    tm = max(sub, tm // sub * sub)

    # Guarantee >=2 row tiles so the "parallel" axis can feed both TensorCores
    # on v7x; costs a single extra ~0.35us grid step on 1-TC chips.
    if rows > sub and pl.cdiv(rows, tm) < 2:
        tm = max(sub, _round_up(pl.cdiv(rows, 2), sub))

    return int(tm), int(tk)


def _fusion_kernel(flow_ref, time_ref,
                   ws_ref, wt_ref, wo_ref,
                   bst_ref, bo_ref,
                   out_ref, *scratch, tk, num_k):
    """One (row-tile, feature-chunk) step.

    Grid axis 0: row tiles ("parallel").  Grid axis 1: chunks of the feature
    dim, used both as the gate output columns and as the W_O contraction dim
    ("arbitrary" reduction when num_k > 1).
    """
    acc_ref = scratch[0] if scratch else None
    k = pl.program_id(1)
    w_dtype = ws_ref.dtype

    if num_k > 1:
        @pl.when(k == 0)
        def _init():
            acc_ref[...] = jnp.zeros_like(acc_ref)

    flow = flow_ref[...]
    time = time_ref[...]

    # Fused gate pre-activation chunk:
    #   flow @ Ws^T[:, chunk] + time @ Wt^T[:, chunk] + (b_S + b_T)[chunk]
    # Activations are cast to the weight dtype so bf16 params run at MXU peak.
    gate_pre = (
        jnp.dot(flow.astype(w_dtype), ws_ref[...],
                preferred_element_type=jnp.float32)
        + jnp.dot(time.astype(w_dtype), wt_ref[...],
                  preferred_element_type=jnp.float32)
        + bst_ref[...]
    )
    z = jax.nn.sigmoid(gate_pre)   # rides the EUP slot

    # Blend in the compute dtype when activations == params dtype (e.g. bf16);
    # otherwise stay in f32 (also keeps v5e, which has no bf16 VPU, on f32).
    blend_dtype = flow.dtype if flow.dtype == w_dtype else jnp.float32
    if num_k == 1:
        flow_c = flow.astype(blend_dtype)
        time_c = time.astype(blend_dtype)
    else:
        off = pl.multiple_of(k * tk, tk)
        flow_c = flow_ref[:, pl.ds(off, tk)].astype(blend_dtype)
        time_c = time_ref[:, pl.ds(off, tk)].astype(blend_dtype)

    # H = z*flow + (1-z)*time == time + z*(flow - time)
    h = time_c + z.astype(blend_dtype) * (flow_c - time_c)

    partial = jnp.dot(h.astype(w_dtype), wo_ref[...],
                      preferred_element_type=jnp.float32)

    if num_k == 1:
        out_ref[...] = (partial + bo_ref[...]).astype(out_ref.dtype)
    else:
        acc_ref[...] += partial

        @pl.when(k == num_k - 1)
        def _finalize():
            out_ref[...] = (acc_ref[...] + bo_ref[...]).astype(out_ref.dtype)


def prepare_fusion_params(params, dim, param_dtype=None):
    """One-time prep: transpose PyTorch (out,in) weights to (in,out) and fuse
    the two gate biases.  No feature padding: the kernel uses full-extent
    last-dim blocks, so no per-call pad/slice HBM passes are needed."""
    def prep_w(w):
        wt = jnp.asarray(w).T
        if param_dtype is not None:
            wt = wt.astype(param_dtype)
        return wt

    b_st = (jnp.asarray(params["b_S"]) + jnp.asarray(params["b_T"]))
    return {
        "W_S_T": prep_w(params["W_S"]),
        "W_T_T": prep_w(params["W_T"]),
        "W_O_T": prep_w(params["W_O"]),
        "b_ST": b_st.astype(jnp.float32).reshape(1, dim),
        "b_O": jnp.asarray(params["b_O"]).astype(jnp.float32).reshape(1, dim),
        "dim": dim,
    }


def fusion_pallas(flow_eb, time_eb, prep, *, tm=None, tk=None):
    """flow_eb/time_eb: (..., dim). Returns an array of the same shape."""
    orig_shape = flow_eb.shape
    dim = prep["dim"]
    assert orig_shape[-1] == dim and time_eb.shape == orig_shape

    rows = math.prod(orig_shape[:-1])
    flow2d = flow_eb.reshape(rows, dim)
    time2d = time_eb.reshape(rows, dim)

    act_bytes = flow2d.dtype.itemsize
    w_bytes = prep["W_S_T"].dtype.itemsize

    # Generation-aware VMEM budget with ~15% headroom for Mosaic scratch,
    # semaphores and pipeline bookkeeping.
    budget = int(_vmem_capacity_bytes() * 0.85)
    tm_eff, tk_eff = _choose_tiles(rows, dim, act_bytes, w_bytes, budget, tm, tk)

    n_rows = pl.cdiv(rows, tm_eff)   # ragged last row tile handled by Pallas
    n_k = dim // tk_eff              # tk_eff divides dim by construction

    def vmem_needed(weight_bufs):
        acc_bytes = tm_eff * dim * 4 if n_k > 1 else 0
        return (
            (2 * 2 + 2) * tm_eff * dim * act_bytes                     # acts/out
            + weight_bufs * (3 * dim * tk_eff * w_bytes + tk_eff * 4)  # weights + fused bias
            + dim * 4                                                  # b_O
            + acc_bytes                                                # f32 accumulator
            + tm_eff * (5 * max(tk_eff, 128) + dim) * 4                # f32 temporaries
        )

    cost = pl.CostEstimate(
        flops=6 * rows * dim * dim,
        transcendentals=rows * dim,
        bytes_accessed=(3 * rows * dim * act_bytes
                        + 3 * dim * dim * w_bytes
                        + 2 * dim * 4),
    )

    def build(single_buffer_resident):
        # Weights/biases with a constant index_map only need ONE pipeline
        # buffer; streamed weight chunks (n_k > 1) keep the default 2.
        w_mode = pl.Buffered(1) if (single_buffer_resident and n_k == 1) else None
        bo_mode = pl.Buffered(1) if single_buffer_resident else None

        def spec(shape, index_map, mode=None):
            if mode is None:
                return pl.BlockSpec(shape, index_map)
            return pl.BlockSpec(shape, index_map, pipeline_mode=mode)

        weight_bufs = 1 if (single_buffer_resident and n_k == 1) else 2
        vmem_limit = int(min(max(vmem_needed(weight_bufs) * 5 // 4,
                                 16 * 1024 * 1024), budget))

        scratch = [pltpu.VMEM((tm_eff, dim), jnp.float32)] if n_k > 1 else []

        return pl.pallas_call(
            functools.partial(_fusion_kernel, tk=tk_eff, num_k=n_k),
            out_shape=jax.ShapeDtypeStruct((rows, dim), flow2d.dtype),
            grid=(n_rows, n_k),
            in_specs=[
                spec((tm_eff, dim), lambda i, k: (i, 0)),            # flow
                spec((tm_eff, dim), lambda i, k: (i, 0)),            # time
                spec((dim, tk_eff), lambda i, k: (0, k), w_mode),    # W_S^T
                spec((dim, tk_eff), lambda i, k: (0, k), w_mode),    # W_T^T
                spec((tk_eff, dim), lambda i, k: (k, 0), w_mode),    # W_O^T
                spec((1, tk_eff), lambda i, k: (0, k), w_mode),      # b_S + b_T
                spec((1, dim), lambda i, k: (0, 0), bo_mode),        # b_O
            ],
            out_specs=spec((tm_eff, dim), lambda i, k: (i, 0)),
            scratch_shapes=scratch,
            compiler_params=pltpu.CompilerParams(
                dimension_semantics=("parallel", "arbitrary"),
                vmem_limit_bytes=vmem_limit,
            ),
            cost_estimate=cost,
        )

    args = (flow2d, time2d,
            prep["W_S_T"], prep["W_T_T"], prep["W_O_T"],
            prep["b_ST"], prep["b_O"])

    try:
        out2d = build(True)(*args)
    except Exception:
        # Fallback for JAX versions where pipeline_mode / pl.Buffered(1) is
        # not accepted: identical kernel, default (double) buffering.
        out2d = build(False)(*args)

    return out2d.reshape(orig_shape)


def fusion_reference(flow_eb, time_eb, params):
    xs = flow_eb @ params["W_S"].T + params["b_S"]
    xt = time_eb @ params["W_T"].T + params["b_T"]
    z = jax.nn.sigmoid(xs + xt)
    h = z * flow_eb + (1.0 - z) * time_eb
    return h @ params["W_O"].T + params["b_O"]


def init_params(key, dim):
    ks = jax.random.split(key, 6)
    scale = 1.0 / jnp.sqrt(dim)
    return {
        "W_S": jax.random.uniform(ks[0], (dim, dim), jnp.float32, -scale, scale),
        "b_S": jax.random.uniform(ks[1], (dim,), jnp.float32, -scale, scale),
        "W_T": jax.random.uniform(ks[2], (dim, dim), jnp.float32, -scale, scale),
        "b_T": jax.random.uniform(ks[3], (dim,), jnp.float32, -scale, scale),
        "W_O": jax.random.uniform(ks[4], (dim, dim), jnp.float32, -scale, scale),
        "b_O": jax.random.uniform(ks[5], (dim,), jnp.float32, -scale, scale),
    }


if __name__ == "__main__":
    batch, seq, dim = 2, 8, 32
    key = jax.random.PRNGKey(0)
    k_flow, k_time, k_param = jax.random.split(key, 3)

    flow_eb = jax.random.normal(k_flow, (batch, seq, dim), jnp.float32)
    time_eb = jax.random.normal(k_time, (batch, seq, dim), jnp.float32)
    params = init_params(k_param, dim)

    # One-time parameter prep (transpose / fuse biases) outside the per-call
    # path.  Keep f32 params here to preserve the 1e-5 tolerance; pass
    # param_dtype=jnp.bfloat16 (with bf16 activations) for peak-MXU inference.
    prep = prepare_fusion_params(params, dim)

    out = fusion_pallas(flow_eb, time_eb, prep)
    out = jax.block_until_ready(out)

    ref = fusion_reference(flow_eb, time_eb, params)
    assert out.shape == (batch, seq, dim)
    assert jnp.allclose(out, ref, atol=1e-5, rtol=1e-5), "mismatch vs reference"

    print("KERNEL_OK")
</pallas_src>

<mosaic_0001>
module attributes {stable_mosaic.version = 11 : i64} {
  func.func @_fusion_kernel(%arg0: i32, %arg1: i32, %arg2: memref<8x32xf32, #tpu.memory_space<vmem>>, %arg3: memref<8x32xf32, #tpu.memory_space<vmem>>, %arg4: memref<32x32xf32, #tpu.memory_space<vmem>>, %arg5: memref<32x32xf32, #tpu.memory_space<vmem>>, %arg6: memref<32x32xf32, #tpu.memory_space<vmem>>, %arg7: memref<1x32xf32, #tpu.memory_space<vmem>>, %arg8: memref<1x32xf32, #tpu.memory_space<vmem>>, %arg9: memref<8x32xf32, #tpu.memory_space<vmem>>) attributes {dimension_semantics = [#tpu.dimension_semantics<parallel>, #tpu.dimension_semantics<arbitrary>], iteration_bounds = array<i64: 2, 1>, scalar_prefetch = 0 : i64, scratch_operands = 0 : i64, tpu.core_type = #tpu.core_type<tc>, window_params = [{transform_indices = @transform_0, window_bounds = array<i64: 8, 32>}, {transform_indices = @transform_1, window_bounds = array<i64: 8, 32>}, {pipeline_mode = #tpu.pipeline_mode<synchronous>, transform_indices = @transform_2, window_bounds = array<i64: 32, 32>}, {pipeline_mode = #tpu.pipeline_mode<synchronous>, transform_indices = @transform_3, window_bounds = array<i64: 32, 32>}, {pipeline_mode = #tpu.pipeline_mode<synchronous>, transform_indices = @transform_4, window_bounds = array<i64: 32, 32>}, {pipeline_mode = #tpu.pipeline_mode<synchronous>, transform_indices = @transform_5, window_bounds = array<i64: 1, 32>}, {pipeline_mode = #tpu.pipeline_mode<synchronous>, transform_indices = @transform_6, window_bounds = array<i64: 1, 32>}, {transform_indices = @transform_7, window_bounds = array<i64: 8, 32>}]} {
    %c0 = arith.constant 0 : index
    %c0_0 = arith.constant 0 : index
    %0 = vector.load %arg2[%c0, %c0_0] : memref<8x32xf32, #tpu.memory_space<vmem>>, vector<8x32xf32>
    %c0_1 = arith.constant 0 : index
    %c0_2 = arith.constant 0 : index
    %1 = vector.load %arg3[%c0_1, %c0_2] : memref<8x32xf32, #tpu.memory_space<vmem>>, vector<8x32xf32>
    %c0_3 = arith.constant 0 : index
    %c0_4 = arith.constant 0 : index
    %2 = vector.load %arg4[%c0_3, %c0_4] : memref<32x32xf32, #tpu.memory_space<vmem>>, vector<32x32xf32>
    %cst = arith.constant dense<0.000000e+00> : vector<8x32xf32>
    %3 = tpu.matmul %0, %2, %cst {dimension_numbers = #tpu.dot_dimension_numbers<[1], [0], [0], [1], [0, 0, 1, 1], [], []>} : vector<8x32xf32>, vector<32x32xf32>, vector<8x32xf32> -> vector<8x32xf32>
    %c0_5 = arith.constant 0 : index
    %c0_6 = arith.constant 0 : index
    %4 = vector.load %arg5[%c0_5, %c0_6] : memref<32x32xf32, #tpu.memory_space<vmem>>, vector<32x32xf32>
    %cst_7 = arith.constant dense<0.000000e+00> : vector<8x32xf32>
    %5 = tpu.matmul %1, %4, %cst_7 {dimension_numbers = #tpu.dot_dimension_numbers<[1], [0], [0], [1], [0, 0, 1, 1], [], []>} : vector<8x32xf32>, vector<32x32xf32>, vector<8x32xf32> -> vector<8x32xf32>
    %6 = arith.addf %3, %5 : vector<8x32xf32>
    %c0_8 = arith.constant 0 : index
    %c0_9 = arith.constant 0 : index
    %7 = vector.load %arg7[%c0_8, %c0_9] : memref<1x32xf32, #tpu.memory_space<vmem>>, vector<1x32xf32>
    %8 = vector.broadcast %7 : vector<1x32xf32> to vector<8x32xf32>
    %9 = arith.addf %6, %8 : vector<8x32xf32>
    %10 = arith.negf %9 : vector<8x32xf32>
    %11 = math.exp %10 : vector<8x32xf32>
    %cst_10 = arith.constant 1.000000e+00 : f32
    %12 = vector.broadcast %cst_10 : f32 to vector<8x32xf32>
    %13 = arith.addf %12, %11 : vector<8x32xf32>
    %14 = arith.divf %12, %13 : vector<8x32xf32>
    %15 = arith.subf %0, %1 : vector<8x32xf32>
    %16 = arith.mulf %14, %15 : vector<8x32xf32>
    %17 = arith.addf %1, %16 : vector<8x32xf32>
    %c0_11 = arith.constant 0 : index
    %c0_12 = arith.constant 0 : index
    %18 = vector.load %arg6[%c0_11, %c0_12] : memref<32x32xf32, #tpu.memory_space<vmem>>, vector<32x32xf32>
    %cst_13 = arith.constant dense<0.000000e+00> : vector<8x32xf32>
    %19 = tpu.matmul %17, %18, %cst_13 {dimension_numbers = #tpu.dot_dimension_numbers<[1], [0], [0], [1], [0, 0, 1, 1], [], []>} : vector<8x32xf32>, vector<32x32xf32>, vector<8x32xf32> -> vector<8x32xf32>
    %c0_14 = arith.constant 0 : index
    %c0_15 = arith.constant 0 : index
    %20 = vector.load %arg8[%c0_14, %c0_15] : memref<1x32xf32, #tpu.memory_space<vmem>>, vector<1x32xf32>
    %21 = vector.broadcast %20 : vector<1x32xf32> to vector<8x32xf32>
    %22 = arith.addf %19, %21 : vector<8x32xf32>
    %c0_16 = arith.constant 0 : index
    %c0_17 = arith.constant 0 : index
    %23 = vector.load %arg9[%c0_16, %c0_17] : memref<8x32xf32, #tpu.memory_space<vmem>>, vector<8x32xf32>
    tpu.vector_store %arg9[%c0_16, %c0_17], %22 {strides = array<i32>} : memref<8x32xf32, #tpu.memory_space<vmem>>, vector<8x32xf32>,
    return
  }
  func.func @transform_0(%arg0: i32, %arg1: i32) -> (i32, i32) {
    %c0_i32 = arith.constant 0 : i32
    %c0_i32_0 = arith.constant 0 : i32
    return %arg0, %c0_i32 : i32, i32
  }
  func.func @transform_1(%arg0: i32, %arg1: i32) -> (i32, i32) {
    %c0_i32 = arith.constant 0 : i32
    %c0_i32_0 = arith.constant 0 : i32
    return %arg0, %c0_i32 : i32, i32
  }
  func.func @transform_2(%arg0: i32, %arg1: i32) -> (i32, i32) {
    %c0_i32 = arith.constant 0 : i32
    %c0_i32_0 = arith.constant 0 : i32
    return %c0_i32, %arg1 : i32, i32
  }
  func.func @transform_3(%arg0: i32, %arg1: i32) -> (i32, i32) {
    %c0_i32 = arith.constant 0 : i32
    %c0_i32_0 = arith.constant 0 : i32
    return %c0_i32, %arg1 : i32, i32
  }
  func.func @transform_4(%arg0: i32, %arg1: i32) -> (i32, i32) {
    %c0_i32 = arith.constant 0 : i32
    %c0_i32_0 = arith.constant 0 : i32
    return %arg1, %c0_i32 : i32, i32
  }
  func.func @transform_5(%arg0: i32, %arg1: i32) -> (i32, i32) {
    %c0_i32 = arith.constant 0 : i32
    %c0_i32_0 = arith.constant 0 : i32
    return %c0_i32, %arg1 : i32, i32
  }
  func.func @transform_6(%arg0: i32, %arg1: i32) -> (i32, i32) {
    %c0_i32 = arith.constant 0 : i32
    %c0_i32_0 = arith.constant 0 : i32
    %c0_i32_1 = arith.constant 0 : i32
    return %c0_i32, %c0_i32_0 : i32, i32
  }
  func.func @transform_7(%arg0: i32, %arg1: i32) -> (i32, i32) {
    %c0_i32 = arith.constant 0 : i32
    %c0_i32_0 = arith.constant 0 : i32
    return %arg0, %c0_i32 : i32, i32
  }
}

module attributes {stable_mosaic.version = 11 : i64} {
  func.func @_fusion_kernel(%arg0: i32, %arg1: i32, %arg2: memref<8x32xf32, #tpu.memory_space<vmem>>, %arg3: memref<8x32xf32, #tpu.memory_space<vmem>>, %arg4: memref<32x32xf32, #tpu.memory_space<vmem>>, %arg5: memref<32x32xf32, #tpu.memory_space<vmem>>, %arg6: memref<32x32xf32, #tpu.memory_space<vmem>>, %arg7: memref<1x32xf32, #tpu.memory_space<vmem>>, %arg8: memref<1x32xf32, #tpu.memory_space<vmem>>, %arg9: memref<8x32xf32, #tpu.memory_space<vmem>>) attributes {dimension_semantics = [#tpu.dimension_semantics<parallel>, #tpu.dimension_semantics<arbitrary>], iteration_bounds = array<i64: 2, 1>, scalar_prefetch = 0 : i64, scratch_operands = 0 : i64, tpu.core_type = #tpu.core_type<tc>, window_params = [{transform_indices = @transform_0, window_bounds = array<i64: 8, 32>}, {transform_indices = @transform_1, window_bounds = array<i64: 8, 32>}, {transform_indices = @transform_2, window_bounds = array<i64: 32, 32>}, {transform_indices = @transform_3, window_bounds = array<i64: 32, 32>}, {transform_indices = @transform_4, window_bounds = array<i64: 32, 32>}, {transform_indices = @transform_5, window_bounds = array<i64: 1, 32>}, {pipeline_mode = #tpu.pipeline_mode<synchronous>, transform_indices = @transform_6, window_bounds = array<i64: 1, 32>}, {transform_indices = @transform_7, window_bounds = array<i64: 8, 32>}]} {
    %c0 = arith.constant 0 : index
    %c0_0 = arith.constant 0 : index
    %0 = vector.load %arg2[%c0, %c0_0] : memref<8x32xf32, #tpu.memory_space<vmem>>, vector<8x32xf32>
    %c0_1 = arith.constant 0 : index
    %c0_2 = arith.constant 0 : index
    %1 = vector.load %arg3[%c0_1, %c0_2] : memref<8x32xf32, #tpu.memory_space<vmem>>, vector<8x32xf32>
    %c0_3 = arith.constant 0 : index
    %c0_4 = arith.constant 0 : index
    %2 = vector.load %arg4[%c0_3, %c0_4] : memref<32x32xf32, #tpu.memory_space<vmem>>, vector<32x32xf32>
    %cst = arith.constant dense<0.000000e+00> : vector<8x32xf32>
    %3 = tpu.matmul %0, %2, %cst {dimension_numbers = #tpu.dot_dimension_numbers<[1], [0], [0], [1], [0, 0, 1, 1], [], []>} : vector<8x32xf32>, vector<32x32xf32>, vector<8x32xf32> -> vector<8x32xf32>
    %c0_5 = arith.constant 0 : index
    %c0_6 = arith.constant 0 : index
    %4 = vector.load %arg5[%c0_5, %c0_6] : memref<32x32xf32, #tpu.memory_space<vmem>>, vector<32x32xf32>
    %cst_7 = arith.constant dense<0.000000e+00> : vector<8x32xf32>
    %5 = tpu.matmul %1, %4, %cst_7 {dimension_numbers = #tpu.dot_dimension_numbers<[1], [0], [0], [1], [0, 0, 1, 1], [], []>} : vector<8x32xf32>, vector<32x32xf32>, vector<8x32xf32> -> vector<8x32xf32>
    %6 = arith.addf %3, %5 : vector<8x32xf32>
    %c0_8 = arith.constant 0 : index
    %c0_9 = arith.constant 0 : index
    %7 = vector.load %arg7[%c0_8, %c0_9] : memref<1x32xf32, #tpu.memory_space<vmem>>, vector<1x32xf32>
    %8 = vector.broadcast %7 : vector<1x32xf32> to vector<8x32xf32>
    %9 = arith.addf %6, %8 : vector<8x32xf32>
    %10 = arith.negf %9 : vector<8x32xf32>
    %11 = math.exp %10 : vector<8x32xf32>
    %cst_10 = arith.constant 1.000000e+00 : f32
    %12 = vector.broadcast %cst_10 : f32 to vector<8x32xf32>
    %13 = arith.addf %12, %11 : vector<8x32xf32>
    %14 = arith.divf %12, %13 : vector<8x32xf32>
    %15 = arith.subf %0, %1 : vector<8x32xf32>
    %16 = arith.mulf %14, %15 : vector<8x32xf32>
    %17 = arith.addf %1, %16 : vector<8x32xf32>
    %c0_11 = arith.constant 0 : index
    %c0_12 = arith.constant 0 : index
    %18 = vector.load %arg6[%c0_11, %c0_12] : memref<32x32xf32, #tpu.memory_space<vmem>>, vector<32x32xf32>
    %cst_13 = arith.constant dense<0.000000e+00> : vector<8x32xf32>
    %19 = tpu.matmul %17, %18, %cst_13 {dimension_numbers = #tpu.dot_dimension_numbers<[1], [0], [0], [1], [0, 0, 1, 1], [], []>} : vector<8x32xf32>, vector<32x32xf32>, vector<8x32xf32> -> vector<8x32xf32>
    %c0_14 = arith.constant 0 : index
    %c0_15 = arith.constant 0 : index
    %20 = vector.load %arg8[%c0_14, %c0_15] : memref<1x32xf32, #tpu.memory_space<vmem>>, vector<1x32xf32>
    %21 = vector.broadcast %20 : vector<1x32xf32> to vector<8x32xf32>
    %22 = arith.addf %19, %21 : vector<8x32xf32>
    %c0_16 = arith.constant 0 : index
    %c0_17 = arith.constant 0 : index
    %23 = vector.load %arg9[%c0_16, %c0_17] : memref<8x32xf32, #tpu.memory_space<vmem>>, vector<8x32xf32>
    tpu.vector_store %arg9[%c0_16, %c0_17], %22 {strides = array<i32>} : memref<8x32xf32, #tpu.memory_space<vmem>>, vector<8x32xf32>,
    return
  }
  func.func @transform_0(%arg0: i32, %arg1: i32) -> (i32, i32) {
    %c0_i32 = arith.constant 0 : i32
    %c0_i32_0 = arith.constant 0 : i32
    return %arg0, %c0_i32 : i32, i32
  }
  func.func @transform_1(%arg0: i32, %arg1: i32) -> (i32, i32) {
    %c0_i32 = arith.constant 0 : i32
    %c0_i32_0 = arith.constant 0 : i32
    return %arg0, %c0_i32 : i32, i32
  }
  func.func @transform_2(%arg0: i32, %arg1: i32) -> (i32, i32) {
    %c0_i32 = arith.constant 0 : i32
    %c0_i32_0 = arith.constant 0 : i32
    return %c0_i32, %arg1 : i32, i32
  }
  func.func @transform_3(%arg0: i32, %arg1: i32) -> (i32, i32) {
    %c0_i32 = arith.constant 0 : i32
    %c0_i32_0 = arith.constant 0 : i32
    return %c0_i32, %arg1 : i32, i32
  }
  func.func @transform_4(%arg0: i32, %arg1: i32) -> (i32, i32) {
    %c0_i32 = arith.constant 0 : i32
    %c0_i32_0 = arith.constant 0 : i32
    return %arg1, %c0_i32 : i32, i32
  }
  func.func @transform_5(%arg0: i32, %arg1: i32) -> (i32, i32) {
    %c0_i32 = arith.constant 0 : i32
    %c0_i32_0 = arith.constant 0 : i32
    return %c0_i32, %arg1 : i32, i32
  }
  func.func @transform_6(%arg0: i32, %arg1: i32) -> (i32, i32) {
    %c0_i32 = arith.constant 0 : i32
    %c0_i32_0 = arith.constant 0 : i32
    %c0_i32_1 = arith.constant 0 : i32
    return %c0_i32, %c0_i32_0 : i32, i32
  }
  func.func @transform_7(%arg0: i32, %arg1: i32) -> (i32, i32) {
    %c0_i32 = arith.constant 0 : i32
    %c0_i32_0 = arith.constant 0 : i32
    return %arg0, %c0_i32 : i32, i32
  }
}

</mosaic_0001>

<bundles_post_ra>
// kernel: tpu_custom_call.1
= control target key start
LH: loop header
LB: loop body
LE: loop exit
PB: predicated region body
PF: predicated region fallthrough
CT: control target
= control target key end

     0   :  { %s1534_s0 = inlined_call_operand.hbm [shape: f32[16,32], index: 0, kind: input, shape index: {}]   ;;  %s1535_s1 = inlined_call_operand.hbm [shape: f32[16,32], index: 1, kind: input, shape index: {}]   ;;  %s1536_s2 = inlined_call_operand.hbm [shape: f32[32,32], index: 2, kind: input, shape index: {}]   ;;  %s1537_s3 = inlined_call_operand.hbm [shape: f32[32,32], index: 3, kind: input, shape index: {}]   ;;  %s1538_s4 = inlined_call_operand.hbm [shape: f32[32,32], index: 4, kind: input, shape index: {}]   ;;  %s1539_s5 = inlined_call_operand.vmem [shape: f32[1,32], index: 5, kind: input, shape index: {}]   ;;  %s1540_s6 = inlined_call_operand.vmem [shape: f32[1,32], index: 6, kind: input, shape index: {}]   ;;  %s1541_s7 = inlined_call_operand.hbm [shape: f32[16,32], index: 7, kind: output, shape index: {}]  }
   0x1   :  { %1545 = sst [smem:[#allocation18_spill]] %s1534_s0 }
   0x2   :  { %1546 = sst [smem:[#allocation19_spill]] %s1536_s2 }
   0x3   :  { %1547 = sst [smem:[#allocation20_spill]] %s1537_s3 }
   0x4   :  { %1548 = sst [smem:[#allocation21_spill]] %s1538_s4 }
   0x5   :  { %12 = vsyncpa [#allocation3], 0 }
   0x6   :  { %14 = vsyncpa [#allocation3 + $0x1], 0 }
   0x7   :  { %15 = vsyncpa [#allocation6], 0 }
   0x8   :  { %17 = vsyncpa [#allocation6 + $0x1], 0 }
   0x9   :  { %18 = vsyncpa [#allocation9], 0 }
   0xa   :  { %19 = vsyncpa [#allocation4], 0 }
   0xb   :  { %21 = vsyncpa [#allocation4 + $0x1], 0  ;;  %s1304_s24 = smov 0   ;;  %s1306_s25 = smov 0  }
   0xc   :  { %s1308_s26 = smov 0   ;;  %s1310_s27 = smov 0  }
   0xd   :  { %s1312_s28 = smov 0   ;;  %s1314_s29 = smov 0  }
   0xe LB: > { %s1335_s30 = sadd.s32 4294967295, %s1252_s29   ;;  %s844_s8 = sadd.s32 4294967294, %s1252_s29   ;;  %s1252_s29 = sphi %s1314_s29, %s27_s29   ;;  %s1248_s28 = sphi %s1312_s28, %s1573_s28   ;;  %s1244_s27 = sphi %s1310_s27, %s1572_s27   ;;  %s1240_s26 = sphi %s1308_s26, %s1571_s26   ;;  %s1236_s25 = sphi %s1306_s25, %s1570_s25   ;;  %s1232_s24 = sphi %s1304_s24, %s1569_s24  }
   0xf   : > { %p59_p0 = scmp.ne.s32.totalorder %s1236_s25, %s1232_s24  ;;  %p1542_p1 = scmp.eq.s32.totalorder %s1335_s30, 0 }
  0x10   : > { %p240_p3 = scmp.eq.s32.totalorder %s844_s8, 1  ;;  %p845_p5 = scmp.ge.s32.totalorder %s1252_s29, 1 }
  0x11   : > { %p1344_p4 = por %p1542_p1, %p59_p0  ;;  %p247_p7 = scmp.lt.s32.totalorder %s1252_s29, 3 }
  0x12   : > { %p1349_p6 = por %p240_p3, %p59_p0  ;;  %s1254_s12 = smov [#allocation7]  }
  0x13   : > { %s1549_s9 = scalar_select %p1344_p4, 1, 0 }
  0x14   : > { %s1550_s10 = scalar_select %p1349_p6, 1, 0 }
  0x15   : > { %p1354_p8 = pnand %p845_p5, %p247_p7  ;;  %s261_s13 = sshll.u32 %s1254_s12, 4  ;;  %s262_s13 = int_to_ptr.vmem [resolvable:$true] %s261_s13 }
  0x16   : > { %s1255_s15 = smov [#allocation8]   ;;  %s1256_s17 = smov [#allocation10]  }
  0x17   : > { %p938_p9 = pneg %p1354_p8  ;;  %s276_s16 = sshll.u32 %s1255_s15, 4  ;;  %s277_s16 = int_to_ptr.vmem [resolvable:$true] %s276_s16 }
  0x18   : > { %s292_s18 = sshll.u32 %s1256_s17, 4  ;;  %s1037_s19 = scalar_lea.vmem %s262_s13, 512  ;;  %s293_s18 = int_to_ptr.vmem [resolvable:$true] %s292_s18 }
  0x19   : > { %p1363_p11 = pnand %p938_p9, %p1542_p1  ;;  %p1038_p13 = scmp.ne.s32.totalorder %s262_s13, %s1037_s19 }
  0x1a   : > { %p1045_p5 = scmp.lt.s32.totalorder %s262_s13, %s262_s13  ;;  %p1046_p7 = scmp.lt.s32.totalorder %s1037_s19, %s1037_s19 }
  0x1b   : > { %p1028_p12 = pneg %p1363_p11 }
  0x1c   : > { %p1047_p9 = por %p1046_p7, %p1045_p5 }
  0x1d   : > { %p1040_p0 = pnand %p1038_p13, %p1028_p12 }
  0x1f   : > { %p1041_p3 = pneg %p1040_p0 }
  0x21   : > { %p1048_p10 = pnand %p1047_p9, %p1041_p3 }
  0x23   : > { %1051 = shalt.err (!%p1048_p10)
}
  0x24   : > { %s1257_s20 = smov 128   ;;  %s1258_s21 = smov 8  }
  0x25   : > { %s1553_s2 = sld [smem:[#allocation19_spill]]  ;;  %s1063_s8 = scalar_lea.vmem %s277_s16, 512 }
  0x26   : > { %p1064_p1 = scmp.ne.s32.totalorder %s277_s16, %s1063_s8  ;;  %p1071_p2 = scmp.lt.s32.totalorder %s277_s16, %s277_s16 }
  0x27   : > { %p1072_p6 = scmp.lt.s32.totalorder %s1063_s8, %s1063_s8 }
  0x28   : > { %p1066_p13 = pnand %p1064_p1, %p1028_p12 }
  0x29   : > { %p1073_p5 = por %p1072_p6, %p1071_p2 }
  0x2a   : > { %p1067_p0 = pneg %p1066_p13 }
  0x2b   : > { %941 = dma.hbm_to_vmem [thread:$0]  (!%p1363_p11), %s1553_s2, 512, %s262_s13, [#allocation6], %s1257_s20, %s1257_s20, %s1258_s21  }
  0x2c   : > { %p1074_p3 = pnand %p1073_p5, %p1067_p0 }
  0x2e   : > { %1077 = shalt.err (!%p1074_p3)
}
  0x2f   : > { %s1554_s3 = sld [smem:[#allocation20_spill]]  ;;  %s1089_s13 = scalar_lea.vmem %s293_s18, 512 }
  0x30   : > { %p1090_p10 = scmp.ne.s32.totalorder %s293_s18, %s1089_s13  ;;  %p1097_p9 = scmp.lt.s32.totalorder %s293_s18, %s293_s18 }
  0x31   : > { %p1098_p13 = scmp.lt.s32.totalorder %s1089_s13, %s1089_s13 }
  0x32   : > { %p1092_p7 = pnand %p1090_p10, %p1028_p12 }
  0x33   : > { %p1099_p4 = por %p1098_p13, %p1097_p9 }
  0x34   : > { %p1093_p1 = pneg %p1092_p7 }
  0x35   : > { %944 = dma.hbm_to_vmem [thread:$0]  (!%p1363_p11), %s1554_s3, 512, %s277_s16, [#allocation9], %s1257_s20, %s1257_s20, %s1258_s21  }
  0x36   : > { %p1100_p2 = pnand %p1099_p4, %p1093_p1 }
  0x38   : > { %1103 = shalt.err (!%p1100_p2)
}
  0x39   : > { %s1555_s4 = sld [smem:[#allocation21_spill]]  ;;  %s46_s16 = sadd.s32 1, %s1240_s26 }
  0x3a   : > { %s39_s22 = sadd.s32 1, %s1248_s28  ;;  %p53_p4 = scmp.ne.s32.totalorder %s1240_s26, %s1236_s25 }
  0x3b   : > { %p41_p6 = scmp.ge.s32.totalorder %s39_s22, 2  ;;  %p54_p12 = scmp.eq.s32.totalorder %s1252_s29, 0 }
  0x3c   : > { %p1556_p0 = scmp.eq.s32.totalorder %s1335_s30, 1  ;;  %p962_p3 = scmp.lt.s32.totalorder %s1252_s29, 2 }
  0x3d   : > { %s1575_s22 = smov (%p41_p6, %s39_s22), 0  ;;  %p55_p10 = por %p54_p12, %p53_p4 }
  0x3e   : > { %p1400_p5 = por %p1556_p0, %p53_p4  ;;  %1558 = sst [smem:[#allocation17_spill]] %s1575_s22 }
  0x3f   : > { %947 = dma.hbm_to_vmem [thread:$0]  (!%p1363_p11), %s1555_s4, 512, %s293_s18, [#allocation9], %s1257_s20, %s1257_s20, %s1258_s21  }
  0x40   : > { %s315_s23 = sand.u32 1, %s1240_s26   ;;  %s43_s8 = ssub.s32 %s1248_s28, %s1575_s22 }
  0x41   : > { %p44_p11 = scmp.eq.s32.totalorder %s43_s8, 0  ;;  %s851_s18 = sshll.u32 %s315_s23, 3 }
  0x42   : > { %s852_s20 = sshll.u32 %s1248_s28, 7  ;;  %s1559_s0 = sld [smem:[#allocation18_spill]] }
  0x43   : > { %s1412_s21 = scalar_select %p44_p11, %s1240_s26, %s46_s16  }
  0x44   : > { %s319_s17 = scalar_lea.vmem [#allocation2], %s851_s18  ;;  %p1419_p7 = pnand %p962_p3, %p55_p10 }
  0x45   : > { %s326_s19 = sshll.u32 %s319_s17, 4  ;;  %s1426_s8 = scalar_lea.hbm %s1535_s1, %s852_s20  ;;  %s327_s19 = int_to_ptr.vmem [resolvable:$true] %s326_s19 }
  0x46   : > { %s333_s16 = sand.u32 1, %s1252_s29   ;;  %s316_s22 = scalar_lea.sflag [#allocation3], %s315_s23 }
  0x47   : > { %p1106_p1 = pneg %p1419_p7  ;;  %s1117_s12 = scalar_lea.vmem %s327_s19, 128 }
  0x48   : > { %s324_s13 = scalar_lea.hbm %s1559_s0, %s852_s20  ;;  %p1118_p9 = scmp.ne.s32.totalorder %s327_s19, %s1117_s12 }
  0x49   : > { %s1259_s15 = smov [#allocation2]  }
  0x4a   : > { %p1120_p13 = pnand %p1118_p9, %p1106_p1  ;;  %s1122_s17 = sshll.u32 %s1259_s15, 4  ;;  %s1123_s17 = int_to_ptr.vmem [resolvable:$false] %s1122_s17 }
  0x4b   : > { %s1124_s0 = scalar_lea.vmem %s1123_s17, 256  ;;  %p1125_p4 = scmp.lt.s32.totalorder %s327_s19, %s1123_s17 }
  0x4c   : > { %p1121_p2 = pneg %p1120_p13  ;;  %p1126_p6 = scmp.lt.s32.totalorder %s1124_s0, %s1117_s12 }
  0x4e   : > { %p1127_p12 = por %p1126_p6, %p1125_p4 }
  0x50   : > { %p1128_p0 = pnand %p1127_p12, %p1121_p2 }
  0x52   : > { %1131 = shalt.err (!%p1128_p0)
}
  0x53   : > { %951 = dma.hbm_to_vmem [thread:$0]  (!%p1419_p7), %s324_s13, 128, %s327_s19, %s316_s22  }
  0x54   : > { %s337_s3 = scalar_lea.vmem [#allocation5], %s851_s18  ;;  %s334_s23 = scalar_lea.sflag [#allocation6], %s333_s16 }
  0x55   : > { %s344_s4 = sshll.u32 %s337_s3, 4  ;;  %s1260_s15 = smov [#allocation5]   ;;  %s345_s4 = int_to_ptr.vmem [resolvable:$true] %s344_s4 }
  0x56   : > { %s1145_s20 = scalar_lea.vmem %s345_s4, 128  ;;  %s1150_s17 = sshll.u32 %s1260_s15, 4  ;;  %s1151_s17 = int_to_ptr.vmem [resolvable:$false] %s1150_s17 }
  0x57   : > { %p1146_p3 = scmp.ne.s32.totalorder %s345_s4, %s1145_s20  ;;  %s1152_s0 = scalar_lea.vmem %s1151_s17, 256 }
  0x58   : > { %p1153_p9 = scmp.lt.s32.totalorder %s345_s4, %s1151_s17  ;;  %p1154_p13 = scmp.lt.s32.totalorder %s1152_s0, %s1145_s20 }
  0x59   : > { %p1148_p10 = pnand %p1146_p3, %p1106_p1 }
  0x5a   : > { %p1155_p2 = por %p1154_p13, %p1153_p9 }
  0x5b   : > { %p1149_p11 = pneg %p1148_p10 }
  0x5d   : > { %p1156_p4 = pnand %p1155_p2, %p1149_p11 }
  0x5f   : > { %1159 = shalt.err (!%p1156_p4)
}
  0x60   : > { %954 = dma.hbm_to_vmem [thread:$0]  (!%p1419_p7), %s1426_s8, 128, %s345_s4, %s334_s23  }
  0x61   : > { %353 = sbr.rel (%p1354_p8) target bundleno = 564 (0x234), region = 48  ;;  %s1445_s22 = sand.u32 (!%p1354_p8), 1, %s1236_s25  }
  0x62   : > { %s1448_s18 = sshll.u32 (!%p1354_p8), %s1445_s22, 3  ;;  %s356_s13 = scalar_lea.sflag (!%p1354_p8), [#allocation3], %s1445_s22 }
  0x63   : > { %s359_s19 = scalar_lea.vmem (!%p1354_p8), [#allocation2], %s1448_s18  ;;  %p1561_p1 = scmp.ne.s32.totalorder (!%p1354_p8), %s1549_s9, 0 }
  0x66   : > { %1211 = dma.done.wait (%p1561_p1), %s356_s13, 128  }
  0x67   : > { %1213 = vsyncadd (%p1561_p1), %s356_s13, 4294967168  ;;  %s364_s2 = sand.u32 1, %s1335_s30   ;;  %s368_s8 = scalar_lea.vmem [#allocation5], %s1448_s18 }
  0x68   : > { %s365_s11 = scalar_lea.sflag [#allocation6], %s364_s2 }
  0x69   : > { %1215 = dma.done.wait (%p1561_p1), %s365_s11, 128  }
  0x6a   : > { %1217 = vsyncadd (%p1561_p1), %s365_s11, 4294967168  ;;  %p1562_p8 = scmp.eq.s32.totalorder %s1335_s30, 0 }
  0x6c   : > { %1219 = dma.done.wait (%p1562_p8), [#allocation6], 512   ;;  %p1563_p7 = pmov %p1562_p8 }
  0x6e   : > { %1221 = vsyncadd (%p1563_p7), [#allocation6], 4294966784  ;;  %p1564_p6 = pmov %p1563_p7 }
  0x70   : > { %1223 = dma.done.wait (%p1564_p6), [#allocation9], 1024   ;;  %p1565_p12 = pmov %p1564_p6 }
  0x71   : > { %v1261_v0 = vmov 0.0   ;;  %vm1262_vm0 = vmmov 0   ;;  %v432_v1 = vld [vmem:[#allocation8 + $0x18] sm:$0xff]  ;;  %v431_v3 = vld [vmem:[#allocation8 + $0x10] sm:$0xff]  ;;  %v430_v5 = vld [vmem:[#allocation8 + $0x8] sm:$0xff]  ;;  %vm433_vm1 = vcmask 261120  }
  0x72   : > { %1225 = vsyncadd (%p1565_p12), [#allocation9], 4294966272  ;;  %887 = vmatprep.subr.mxu0 %v1261_v0  ;;  %898 = vmatprep.subr.mxu1 %v1261_v0  ;;  %v428_v2 = vld [vmem:[#allocation7 + $0x18] sm:$0xff]  ;;  %v427_v4 = vld [vmem:[#allocation7 + $0x10] sm:$0xff]  ;;  %s869_s3 = sshll.u32 %s1244_s27, 7  ;;  %s418_s4 = scalar_lea.vmem [#allocation11], %s1448_s18 }
  0x73   : > { %895 = vmatprep.mubr.msk.f32.mxu0 %vm1262_vm0, %v1261_v0  ;;  %906 = vmatprep.mubr.msk.f32.mxu1 %vm1262_vm0, %v1261_v0  ;;  %v426_v6 = vld [vmem:[#allocation7 + $0x8] sm:$0xff]  ;;  %v429_v7 = vld [vmem:[#allocation8] sm:$0xff]  ;;  %v424_v9 = vld [vmem:[%s368_s8] sm:$0xff]  ;;  %s696_s23 = sshll.u32 %s418_s4, 4  ;;  %s1491_s17 = scalar_lea.hbm %s1541_s7, %s869_s3  ;;  %s697_s23 = int_to_ptr.vmem [resolvable:$true] %s696_s23 }
  0x74   : > { %888 = vmatpush3.msra.mxu0 %v432_v1  ;;  %899 = vmatpush3.msra.mxu1 %v428_v2  ;;  %v425_v8 = vld [vmem:[#allocation7] sm:$0xff]  ;;  %v600_v11 = vld [vmem:[#allocation10 + $0x18] sm:$0xff]  ;;  %v599_v12 = vld [vmem:[#allocation10 + $0x10] sm:$0xff]  ;;  %s683_s0 = scalar_lea.sflag [#allocation4], %s1445_s22  ;;  %s1160_s13 = scalar_lea.vmem %s697_s23, 128 }
  0x75   : > { %889 = vmatprep.subr.mxu0 %v1261_v0  ;;  %900 = vmatprep.subr.mxu1 %v1261_v0  ;;  %v423_v10 = vld [vmem:[%s359_s19] sm:$0xff]  ;;  %p1161_p0 = scmp.ne.s32.totalorder %s697_s23, %s1160_s13  ;;  %s1263_s27 = smov [#allocation11]  }
  0x76   : > { %890 = vmatpush3.msra.mxu0 %v431_v3  ;;  %901 = vmatpush3.msra.mxu1 %v427_v4  ;;  %v598_v13 = vld [vmem:[#allocation10 + $0x8] sm:$0xff]  ;;  %v597_v14 = vld [vmem:[#allocation10] sm:$0xff]  ;;  %v594_v25 = vsub.f32 %v423_v10, %v424_v9  ;;  %s1164_s18 = sshll.u32 %s1263_s27, 4  ;;  %s1165_s18 = int_to_ptr.vmem [resolvable:$false] %s1164_s18 }
  0x77   : > { %891 = vmatprep.subr.mxu0 %v1261_v0  ;;  %902 = vmatprep.subr.mxu1 %v1261_v0  ;;  %v864_v17 = vld [vmem:[%s1539_s5] ss:$0 sm:$0xff]  ;;  %p1162_p3 = pnand %p1161_p0, %p1400_p5  ;;  %s1166_s19 = scalar_lea.vmem %s1165_s18, 256 }
  0x78   : > { %892 = vmatpush3.msra.mxu0 %v430_v5  ;;  %903 = vmatpush3.msra.mxu1 %v426_v6  ;;  %v866_v29 = vld [vmem:[%s1540_s6] ss:$0 sm:$0xff]  ;;  %p1167_p11 = scmp.lt.s32.totalorder %s697_s23, %s1165_s18  ;;  %p1168_p9 = scmp.lt.s32.totalorder %s1166_s19, %s1160_s13 }
  0x79   : > { %893 = vmatprep.subr.mxu0 %v1261_v0  ;;  %904 = vmatprep.subr.mxu1 %v1261_v0  ;;  %p1163_p10 = pneg %p1162_p3 }
  0x7a   : > { %894 = vmatpush3.msra.mxu0 %v429_v7  ;;  %905 = vmatpush3.msra.mxu1 %v425_v8  ;;  %p1169_p13 = por %p1168_p9, %p1167_p11 }
  0x7b   : > { %896 = vmatmul.mubr.msk.f32.vlgmr.msra.gmra.mxu0 %vm433_vm1, %v424_v9  ;;  %907 = vmatmul.mubr.msk.f32.vlgmr.msra.gmra.mxu1 %vm433_vm1, %v423_v10 }
  0x7c   : > { %909 = vmatprep.subr.mxu0 %v1261_v0  ;;  %917 = vmatprep.mubr.msk.f32.mxu0 %vm1262_vm0, %v1261_v0  ;;  %p1170_p2 = pnand %p1169_p13, %p1163_p10 }
  0x7d   : > { %910 = vmatpush3.msra.mxu0 %v600_v11 }
  0x7e   : > { %911 = vmatprep.subr.mxu0 %v1261_v0 }
  0x7f   : > { %912 = vmatpush3.msra.mxu0 %v599_v12 }
  0x80   : > { %913 = vmatprep.subr.mxu0 %v1261_v0 }
  0x81   : > { %914 = vmatpush3.msra.mxu0 %v598_v13 }
  0x82   : > { %915 = vmatprep.subr.mxu0 %v1261_v0 }
  0x83   : > { %916 = vmatpush3.msra.mxu0 %v597_v14 }
 0x13b   : > { %v503_v15 = vpop.f32.mrf.mxu0  ;;  %v576_v16 = vpop.f32.mrf.mxu1 }
 0x13c   : > { %v577_v18 = vadd.f32 %v576_v16, %v503_v15 }
 0x13d   : > { %v897_v19 = vpop.f32.mrf.mxu0  ;;  %v908_v20 = vpop.f32.mrf.mxu1 }
 0x13e   : > { %v587_v21 = vadd.f32 %v864_v17, %v577_v18 }
 0x140   : > { %v865_v22 = vmul.f32 -1.442695, %v587_v21 }
 0x142   : > { %1022 = vpow2.f32 %v865_v22 }
 0x14f   : > { %v1023_v23 = vpop.eup %1022 }
 0x150   : > { %v591_v24 = vadd.f32 1.0, %v1023_v23 }
 0x152   : > { %1024 = vrcp.f32 %v591_v24 }
 0x15f   : > { %v1025_v26 = vpop.eup %1024 }
 0x160   : > { %v595_v27 = vmul.f32 %v1025_v26, %v594_v25 }
 0x162   : > { %v596_v28 = vadd.f32 %v595_v27, %v424_v9 }
 0x164   : > { %918 = vmatmul.mubr.msk.f32.vlgmr.msra.gmra.mxu0 %vm433_vm1, %v596_v28 }
 0x224   : > { %v677_v30 = vpop.f32.mrf.mxu0 }
 0x225   : > { %v678_v31 = vadd.f32 %v866_v29, %v677_v30 }
 0x226   : > { %v919_v32 = vpop.f32.mrf.mxu0 }
 0x227   : > { %681 = vst.msk [vmem:[%s418_s4] sm:$0xff] %vm433_vm1, %v678_v31 }
 0x228   : > { %1173 = shalt.err (!%p1170_p2)
}
 0x229   : > { %s1174_s2 = scalar_lea.hbm %s1491_s17, 128  ;;  %s1178_s8 = scalar_lea.hbm %s1541_s7, 256 }
 0x22a   : > { %p1175_p4 = scmp.ne.s32.totalorder %s1491_s17, %s1174_s2  ;;  %p1179_p7 = scmp.lt.s32.totalorder %s1491_s17, %s1541_s7 }
 0x22b   : > { %p1180_p6 = scmp.lt.s32.totalorder %s1178_s8, %s1174_s2 }
 0x22c   : > { %p1176_p1 = pnand %p1175_p4, %p1400_p5 }
 0x22d   : > { %p1181_p12 = por %p1180_p6, %p1179_p7 }
 0x22e   : > { %p1177_p8 = pneg %p1176_p1 }
 0x230   : > { %p1182_p0 = pnand %p1181_p12, %p1177_p8 }
 0x232   : > { %1185 = shalt.err (!%p1182_p0)
}
 0x233   : > { %936 = dma.vmem_to_hbm [thread:$0]  (%p1400_p5), %s697_s23, 128, %s1491_s17, %s683_s0  }
 0x234 PF: > { %s708_s16 = sand.u32 1, %s1232_s24   ;;  %p1566_p3 = scmp.ne.s32.totalorder %s1550_s10, 0 }
 0x235   : > { %p1567_p10 = scmp.ge.s32.totalorder %s1252_s29, 2  ;;  %s709_s12 = scalar_lea.sflag [#allocation4], %s708_s16 }
 0x237   : > { %p956_p11 = pnand %p1567_p10, %p1566_p3 }
 0x239   : > { %p957_p9 = pneg %p956_p11 }
 0x23b   : > { %1227 = dma.done.wait (%p957_p9), %s709_s12, 128  }
 0x23c   : > { %1229 = vsyncadd (%p957_p9), %s709_s12, 4294967168  ;;  %s27_s29 = sadd.s32 1, %s1252_s29   ;;  %s1568_s14 = sld [smem:[#allocation17_spill]] }
 0x23d   : > { %p24_p13 = scmp.ge.s32.totalorder %s27_s29, 4   ;;  %s1569_s24 = smov %s1236_s25 }
 0x23e   : > { %s1570_s25 = smov %s1240_s26  ;;  %s1571_s26 = smov %s1412_s21 }
 0x23f   : > { %s1572_s27 = smov %s1248_s28  ;;  %26 = sbr.rel (!%p24_p13) target bundleno = 14 (0xe), region = 124 }
 0x242   : > { %s1573_s28 = smov %s1568_s14 }
 0x244   :  { %714 = vsyncpa [#allocation3], 1 }
 0x245   :  { %716 = vsyncpa [#allocation3 + $0x1], 1 }
 0x246   :  { %717 = vsyncpa [#allocation6], 1 }
 0x247   :  { %719 = vsyncpa [#allocation6 + $0x1], 1 }
 0x248   :  { %720 = vsyncpa [#allocation9], 1 }
 0x249   :  { %721 = vsyncpa [#allocation4], 1 }
 0x24a   :  { %723 = vsyncpa [#allocation4 + $0x1], 1 }

// kernel: tpu_custom_call.1
= control target key start
LH: loop header
LB: loop body
LE: loop exit
PB: predicated region body
PF: predicated region fallthrough
CT: control target
= control target key end

     0   :  { %s1534_s0 = inlined_call_operand.hbm [shape: f32[16,32], index: 0, kind: input, shape index: {}]   ;;  %s1535_s1 = inlined_call_operand.hbm [shape: f32[16,32], index: 1, kind: input, shape index: {}]   ;;  %s1536_s2 = inlined_call_operand.hbm [shape: f32[32,32], index: 2, kind: input, shape index: {}]   ;;  %s1537_s3 = inlined_call_operand.hbm [shape: f32[32,32], index: 3, kind: input, shape index: {}]   ;;  %s1538_s4 = inlined_call_operand.hbm [shape: f32[32,32], index: 4, kind: input, shape index: {}]   ;;  %s1539_s5 = inlined_call_operand.vmem [shape: f32[1,32], index: 5, kind: input, shape index: {}]   ;;  %s1540_s6 = inlined_call_operand.vmem [shape: f32[1,32], index: 6, kind: input, shape index: {}]   ;;  %s1541_s7 = inlined_call_operand.hbm [shape: f32[16,32], index: 7, kind: output, shape index: {}]  }
   0x1   :  { %1545 = sst [smem:[#allocation18_spill]] %s1534_s0 }
   0x2   :  { %1546 = sst [smem:[#allocation19_spill]] %s1536_s2 }
   0x3   :  { %1547 = sst [smem:[#allocation20_spill]] %s1537_s3 }
   0x4   :  { %1548 = sst [smem:[#allocation21_spill]] %s1538_s4 }
   0x5   :  { %12 = vsyncpa [#allocation3], 0 }
   0x6   :  { %14 = vsyncpa [#allocation3 + $0x1], 0 }
   0x7   :  { %15 = vsyncpa [#allocation6], 0 }
   0x8   :  { %17 = vsyncpa [#allocation6 + $0x1], 0 }
   0x9   :  { %18 = vsyncpa [#allocation9], 0 }
   0xa   :  { %19 = vsyncpa [#allocation4], 0 }
   0xb   :  { %21 = vsyncpa [#allocation4 + $0x1], 0  ;;  %s1304_s24 = smov 0   ;;  %s1306_s25 = smov 0  }
   0xc   :  { %s1308_s26 = smov 0   ;;  %s1310_s27 = smov 0  }
   0xd   :  { %s1312_s28 = smov 0   ;;  %s1314_s29 = smov 0  }
   0xe LB: > { %s1335_s30 = sadd.s32 4294967295, %s1252_s29   ;;  %s844_s8 = sadd.s32 4294967294, %s1252_s29   ;;  %s1252_s29 = sphi %s1314_s29, %s27_s29   ;;  %s1248_s28 = sphi %s1312_s28, %s1573_s28   ;;  %s1244_s27 = sphi %s1310_s27, %s1572_s27   ;;  %s1240_s26 = sphi %s1308_s26, %s1571_s26   ;;  %s1236_s25 = sphi %s1306_s25, %s1570_s25   ;;  %s1232_s24 = sphi %s1304_s24, %s1569_s24  }
   0xf   : > { %p59_p0 = scmp.ne.s32.totalorder %s1236_s25, %s1232_s24  ;;  %p1542_p1 = scmp.eq.s32.totalorder %s1335_s30, 0 }
  0x10   : > { %p240_p3 = scmp.eq.s32.totalorder %s844_s8, 1  ;;  %p845_p5 = scmp.ge.s32.totalorder %s1252_s29, 1 }
  0x11   : > { %p1344_p4 = por %p1542_p1, %p59_p0  ;;  %p247_p7 = scmp.lt.s32.totalorder %s1252_s29, 3 }
  0x12   : > { %p1349_p6 = por %p240_p3, %p59_p0  ;;  %s1254_s12 = smov [#allocation7]  }
  0x13   : > { %s1549_s9 = scalar_select %p1344_p4, 1, 0 }
  0x14   : > { %s1550_s10 = scalar_select %p1349_p6, 1, 0 }
  0x15   : > { %p1354_p8 = pnand %p845_p5, %p247_p7  ;;  %s261_s13 = sshll.u32 %s1254_s12, 4  ;;  %s262_s13 = int_to_ptr.vmem [resolvable:$true] %s261_s13 }
  0x16   : > { %s1255_s15 = smov [#allocation8]   ;;  %s1256_s17 = smov [#allocation10]  }
  0x17   : > { %p938_p9 = pneg %p1354_p8  ;;  %s276_s16 = sshll.u32 %s1255_s15, 4  ;;  %s277_s16 = int_to_ptr.vmem [resolvable:$true] %s276_s16 }
  0x18   : > { %s292_s18 = sshll.u32 %s1256_s17, 4  ;;  %s1037_s19 = scalar_lea.vmem %s262_s13, 512  ;;  %s293_s18 = int_to_ptr.vmem [resolvable:$true] %s292_s18 }
  0x19   : > { %p1363_p11 = pnand %p938_p9, %p1542_p1  ;;  %p1038_p13 = scmp.ne.s32.totalorder %s262_s13, %s1037_s19 }
  0x1a   : > { %p1045_p5 = scmp.lt.s32.totalorder %s262_s13, %s262_s13  ;;  %p1046_p7 = scmp.lt.s32.totalorder %s1037_s19, %s1037_s19 }
  0x1b   : > { %p1028_p12 = pneg %p1363_p11 }
  0x1c   : > { %p1047_p9 = por %p1046_p7, %p1045_p5 }
  0x1d   : > { %p1040_p0 = pnand %p1038_p13, %p1028_p12 }
  0x1f   : > { %p1041_p3 = pneg %p1040_p0 }
  0x21   : > { %p1048_p10 = pnand %p1047_p9, %p1041_p3 }
  0x23   : > { %1051 = shalt.err (!%p1048_p10)
}
  0x24   : > { %s1257_s20 = smov 128   ;;  %s1258_s21 = smov 8  }
  0x25   : > { %s1553_s2 = sld [smem:[#allocation19_spill]]  ;;  %s1063_s8 = scalar_lea.vmem %s277_s16, 512 }
  0x26   : > { %p1064_p1 = scmp.ne.s32.totalorder %s277_s16, %s1063_s8  ;;  %p1071_p2 = scmp.lt.s32.totalorder %s277_s16, %s277_s16 }
  0x27   : > { %p1072_p6 = scmp.lt.s32.totalorder %s1063_s8, %s1063_s8 }
  0x28   : > { %p1066_p13 = pnand %p1064_p1, %p1028_p12 }
  0x29   : > { %p1073_p5 = por %p1072_p6, %p1071_p2 }
  0x2a   : > { %p1067_p0 = pneg %p1066_p13 }
  0x2b   : > { %941 = dma.hbm_to_vmem [thread:$0]  (!%p1363_p11), %s1553_s2, 512, %s262_s13, [#allocation6], %s1257_s20, %s1257_s20, %s1258_s21  }
  0x2c   : > { %p1074_p3 = pnand %p1073_p5, %p1067_p0 }
  0x2e   : > { %1077 = shalt.err (!%p1074_p3)
}
  0x2f   : > { %s1554_s3 = sld [smem:[#allocation20_spill]]  ;;  %s1089_s13 = scalar_lea.vmem %s293_s18, 512 }
  0x30   : > { %p1090_p10 = scmp.ne.s32.totalorder %s293_s18, %s1089_s13  ;;  %p1097_p9 = scmp.lt.s32.totalorder %s293_s18, %s293_s18 }
  0x31   : > { %p1098_p13 = scmp.lt.s32.totalorder %s1089_s13, %s1089_s13 }
  0x32   : > { %p1092_p7 = pnand %p1090_p10, %p1028_p12 }
  0x33   : > { %p1099_p4 = por %p1098_p13, %p1097_p9 }
  0x34   : > { %p1093_p1 = pneg %p1092_p7 }
  0x35   : > { %944 = dma.hbm_to_vmem [thread:$0]  (!%p1363_p11), %s1554_s3, 512, %s277_s16, [#allocation9], %s1257_s20, %s1257_s20, %s1258_s21  }
  0x36   : > { %p1100_p2 = pnand %p1099_p4, %p1093_p1 }
  0x38   : > { %1103 = shalt.err (!%p1100_p2)
}
  0x39   : > { %s1555_s4 = sld [smem:[#allocation21_spill]]  ;;  %s46_s16 = sadd.s32 1, %s1240_s26 }
  0x3a   : > { %s39_s22 = sadd.s32 1, %s1248_s28  ;;  %p53_p4 = scmp.ne.s32.totalorder %s1240_s26, %s1236_s25 }
  0x3b   : > { %p41_p6 = scmp.ge.s32.totalorder %s39_s22, 2  ;;  %p54_p12 = scmp.eq.s32.totalorder %s1252_s29, 0 }
  0x3c   : > { %p1556_p0 = scmp.eq.s32.totalorder %s1335_s30, 1  ;;  %p962_p3 = scmp.lt.s32.totalorder %s1252_s29, 2 }
  0x3d   : > { %s1575_s22 = smov (%p41_p6, %s39_s22), 0  ;;  %p55_p10 = por %p54_p12, %p53_p4 }
  0x3e   : > { %p1400_p5 = por %p1556_p0, %p53_p4  ;;  %1558 = sst [smem:[#allocation17_spill]] %s1575_s22 }
  0x3f   : > { %947 = dma.hbm_to_vmem [thread:$0]  (!%p1363_p11), %s1555_s4, 512, %s293_s18, [#allocation9], %s1257_s20, %s1257_s20, %s1258_s21  }
  0x40   : > { %s315_s23 = sand.u32 1, %s1240_s26   ;;  %s43_s8 = ssub.s32 %s1248_s28, %s1575_s22 }
  0x41   : > { %p44_p11 = scmp.eq.s32.totalorder %s43_s8, 0  ;;  %s851_s18 = sshll.u32 %s315_s23, 3 }
  0x42   : > { %s852_s20 = sshll.u32 %s1248_s28, 7  ;;  %s1559_s0 = sld [smem:[#allocation18_spill]] }
  0x43   : > { %s1412_s21 = scalar_select %p44_p11, %s1240_s26, %s46_s16  }
  0x44   : > { %s319_s17 = scalar_lea.vmem [#allocation2], %s851_s18  ;;  %p1419_p7 = pnand %p962_p3, %p55_p10 }
  0x45   : > { %s326_s19 = sshll.u32 %s319_s17, 4  ;;  %s1426_s8 = scalar_lea.hbm %s1535_s1, %s852_s20  ;;  %s327_s19 = int_to_ptr.vmem [resolvable:$true] %s326_s19 }
  0x46   : > { %s333_s16 = sand.u32 1, %s1252_s29   ;;  %s316_s22 = scalar_lea.sflag [#allocation3], %s315_s23 }
  0x47   : > { %p1106_p1 = pneg %p1419_p7  ;;  %s1117_s12 = scalar_lea.vmem %s327_s19, 128 }
  0x48   : > { %s324_s13 = scalar_lea.hbm %s1559_s0, %s852_s20  ;;  %p1118_p9 = scmp.ne.s32.totalorder %s327_s19, %s1117_s12 }
  0x49   : > { %s1259_s15 = smov [#allocation2]  }
  0x4a   : > { %p1120_p13 = pnand %p1118_p9, %p1106_p1  ;;  %s1122_s17 = sshll.u32 %s1259_s15, 4  ;;  %s1123_s17 = int_to_ptr.vmem [resolvable:$false] %s1122_s17 }
  0x4b   : > { %s1124_s0 = scalar_lea.vmem %s1123_s17, 256  ;;  %p1125_p4 = scmp.lt.s32.totalorder %s327_s19, %s1123_s17 }
  0x4c   : > { %p1121_p2 = pneg %p1120_p13  ;;  %p1126_p6 = scmp.lt.s32.totalorder %s1124_s0, %s1117_s12 }
  0x4e   : > { %p1127_p12 = por %p1126_p6, %p1125_p4 }
  0x50   : > { %p1128_p0 = pnand %p1127_p12, %p1121_p2 }
  0x52   : > { %1131 = shalt.err (!%p1128_p0)
}
  0x53   : > { %951 = dma.hbm_to_vmem [thread:$0]  (!%p1419_p7), %s324_s13, 128, %s327_s19, %s316_s22  }
  0x54   : > { %s337_s3 = scalar_lea.vmem [#allocation5], %s851_s18  ;;  %s334_s23 = scalar_lea.sflag [#allocation6], %s333_s16 }
  0x55   : > { %s344_s4 = sshll.u32 %s337_s3, 4  ;;  %s1260_s15 = smov [#allocation5]   ;;  %s345_s4 = int_to_ptr.vmem [resolvable:$true] %s344_s4 }
  0x56   : > { %s1145_s20 = scalar_lea.vmem %s345_s4, 128  ;;  %s1150_s17 = sshll.u32 %s1260_s15, 4  ;;  %s1151_s17 = int_to_ptr.vmem [resolvable:$false] %s1150_s17 }
  0x57   : > { %p1146_p3 = scmp.ne.s32.totalorder %s345_s4, %s1145_s20  ;;  %s1152_s0 = scalar_lea.vmem %s1151_s17, 256 }
  0x58   : > { %p1153_p9 = scmp.lt.s32.totalorder %s345_s4, %s1151_s17  ;;  %p1154_p13 = scmp.lt.s32.totalorder %s1152_s0, %s1145_s20 }
  0x59   : > { %p1148_p10 = pnand %p1146_p3, %p1106_p1 }
  0x5a   : > { %p1155_p2 = por %p1154_p13, %p1153_p9 }
  0x5b   : > { %p1149_p11 = pneg %p1148_p10 }
  0x5d   : > { %p1156_p4 = pnand %p1155_p2, %p1149_p11 }
  0x5f   : > { %1159 = shalt.err (!%p1156_p4)
}
  0x60   : > { %954 = dma.hbm_to_vmem [thread:$0]  (!%p1419_p7), %s1426_s8, 128, %s345_s4, %s334_s23  }
  0x61   : > { %353 = sbr.rel (%p1354_p8) target bundleno = 564 (0x234), region = 48  ;;  %s1445_s22 = sand.u32 (!%p1354_p8), 1, %s1236_s25  }
  0x62   : > { %s1448_s18 = sshll.u32 (!%p1354_p8), %s1445_s22, 3  ;;  %s356_s13 = scalar_lea.sflag (!%p1354_p8), [#allocation3], %s1445_s22 }
  0x63   : > { %s359_s19 = scalar_lea.vmem (!%p1354_p8), [#allocation2], %s1448_s18  ;;  %p1561_p1 = scmp.ne.s32.totalorder (!%p1354_p8), %s1549_s9, 0 }
  0x66   : > { %1211 = dma.done.wait (%p1561_p1), %s356_s13, 128  }
  0x67   : > { %1213 = vsyncadd (%p1561_p1), %s356_s13, 4294967168  ;;  %s364_s2 = sand.u32 1, %s1335_s30   ;;  %s368_s8 = scalar_lea.vmem [#allocation5], %s1448_s18 }
  0x68   : > { %s365_s11 = scalar_lea.sflag [#allocation6], %s364_s2 }
  0x69   : > { %1215 = dma.done.wait (%p1561_p1), %s365_s11, 128  }
  0x6a   : > { %1217 = vsyncadd (%p1561_p1), %s365_s11, 4294967168  ;;  %p1562_p8 = scmp.eq.s32.totalorder %s1335_s30, 0 }
  0x6c   : > { %1219 = dma.done.wait (%p1562_p8), [#allocation6], 512   ;;  %p1563_p7 = pmov %p1562_p8 }
  0x6e   : > { %1221 = vsyncadd (%p1563_p7), [#allocation6], 4294966784  ;;  %p1564_p6 = pmov %p1563_p7 }
  0x70   : > { %1223 = dma.done.wait (%p1564_p6), [#allocation9], 1024   ;;  %p1565_p12 = pmov %p1564_p6 }
  0x71   : > { %v1261_v0 = vmov 0.0   ;;  %vm1262_vm0 = vmmov 0   ;;  %v432_v1 = vld [vmem:[#allocation8 + $0x18] sm:$0xff]  ;;  %v431_v3 = vld [vmem:[#allocation8 + $0x10] sm:$0xff]  ;;  %v430_v5 = vld [vmem:[#allocation8 + $0x8] sm:$0xff]  ;;  %vm433_vm1 = vcmask 261120  }
  0x72   : > { %1225 = vsyncadd (%p1565_p12), [#allocation9], 4294966272  ;;  %887 = vmatprep.subr.mxu0 %v1261_v0  ;;  %898 = vmatprep.subr.mxu1 %v1261_v0  ;;  %v428_v2 = vld [vmem:[#allocation7 + $0x18] sm:$0xff]  ;;  %v427_v4 = vld [vmem:[#allocation7 + $0x10] sm:$0xff]  ;;  %s869_s3 = sshll.u32 %s1244_s27, 7  ;;  %s418_s4 = scalar_lea.vmem [#allocation11], %s1448_s18 }
  0x73   : > { %895 = vmatprep.mubr.msk.f32.mxu0 %vm1262_vm0, %v1261_v0  ;;  %906 = vmatprep.mubr.msk.f32.mxu1 %vm1262_vm0, %v1261_v0  ;;  %v426_v6 = vld [vmem:[#allocation7 + $0x8] sm:$0xff]  ;;  %v429_v7 = vld [vmem:[#allocation8] sm:$0xff]  ;;  %v424_v9 = vld [vmem:[%s368_s8] sm:$0xff]  ;;  %s696_s23 = sshll.u32 %s418_s4, 4  ;;  %s1491_s17 = scalar_lea.hbm %s1541_s7, %s869_s3  ;;  %s697_s23 = int_to_ptr.vmem [resolvable:$true] %s696_s23 }
  0x74   : > { %888 = vmatpush3.msra.mxu0 %v432_v1  ;;  %899 = vmatpush3.msra.mxu1 %v428_v2  ;;  %v425_v8 = vld [vmem:[#allocation7] sm:$0xff]  ;;  %v600_v11 = vld [vmem:[#allocation10 + $0x18] sm:$0xff]  ;;  %v599_v12 = vld [vmem:[#allocation10 + $0x10] sm:$0xff]  ;;  %s683_s0 = scalar_lea.sflag [#allocation4], %s1445_s22  ;;  %s1160_s13 = scalar_lea.vmem %s697_s23, 128 }
  0x75   : > { %889 = vmatprep.subr.mxu0 %v1261_v0  ;;  %900 = vmatprep.subr.mxu1 %v1261_v0  ;;  %v423_v10 = vld [vmem:[%s359_s19] sm:$0xff]  ;;  %p1161_p0 = scmp.ne.s32.totalorder %s697_s23, %s1160_s13  ;;  %s1263_s27 = smov [#allocation11]  }
  0x76   : > { %890 = vmatpush3.msra.mxu0 %v431_v3  ;;  %901 = vmatpush3.msra.mxu1 %v427_v4  ;;  %v598_v13 = vld [vmem:[#allocation10 + $0x8] sm:$0xff]  ;;  %v597_v14 = vld [vmem:[#allocation10] sm:$0xff]  ;;  %v594_v25 = vsub.f32 %v423_v10, %v424_v9  ;;  %s1164_s18 = sshll.u32 %s1263_s27, 4  ;;  %s1165_s18 = int_to_ptr.vmem [resolvable:$false] %s1164_s18 }
  0x77   : > { %891 = vmatprep.subr.mxu0 %v1261_v0  ;;  %902 = vmatprep.subr.mxu1 %v1261_v0  ;;  %v864_v17 = vld [vmem:[%s1539_s5] ss:$0 sm:$0xff]  ;;  %p1162_p3 = pnand %p1161_p0, %p1400_p5  ;;  %s1166_s19 = scalar_lea.vmem %s1165_s18, 256 }
  0x78   : > { %892 = vmatpush3.msra.mxu0 %v430_v5  ;;  %903 = vmatpush3.msra.mxu1 %v426_v6  ;;  %v866_v29 = vld [vmem:[%s1540_s6] ss:$0 sm:$0xff]  ;;  %p1167_p11 = scmp.lt.s32.totalorder %s697_s23, %s1165_s18  ;;  %p1168_p9 = scmp.lt.s32.totalorder %s1166_s19, %s1160_s13 }
  0x79   : > { %893 = vmatprep.subr.mxu0 %v1261_v0  ;;  %904 = vmatprep.subr.mxu1 %v1261_v0  ;;  %p1163_p10 = pneg %p1162_p3 }
  0x7a   : > { %894 = vmatpush3.msra.mxu0 %v429_v7  ;;  %905 = vmatpush3.msra.mxu1 %v425_v8  ;;  %p1169_p13 = por %p1168_p9, %p1167_p11 }
  0x7b   : > { %896 = vmatmul.mubr.msk.f32.vlgmr.msra.gmra.mxu0 %vm433_vm1, %v424_v9  ;;  %907 = vmatmul.mubr.msk.f32.vlgmr.msra.gmra.mxu1 %vm433_vm1, %v423_v10 }
  0x7c   : > { %909 = vmatprep.subr.mxu0 %v1261_v0  ;;  %917 = vmatprep.mubr.msk.f32.mxu0 %vm1262_vm0, %v1261_v0  ;;  %p1170_p2 = pnand %p1169_p13, %p1163_p10 }
  0x7d   : > { %910 = vmatpush3.msra.mxu0 %v600_v11 }
  0x7e   : > { %911 = vmatprep.subr.mxu0 %v1261_v0 }
  0x7f   : > { %912 = vmatpush3.msra.mxu0 %v599_v12 }
  0x80   : > { %913 = vmatprep.subr.mxu0 %v1261_v0 }
  0x81   : > { %914 = vmatpush3.msra.mxu0 %v598_v13 }
  0x82   : > { %915 = vmatprep.subr.mxu0 %v1261_v0 }
  0x83   : > { %916 = vmatpush3.msra.mxu0 %v597_v14 }
 0x13b   : > { %v503_v15 = vpop.f32.mrf.mxu0  ;;  %v576_v16 = vpop.f32.mrf.mxu1 }
 0x13c   : > { %v577_v18 = vadd.f32 %v576_v16, %v503_v15 }
 0x13d   : > { %v897_v19 = vpop.f32.mrf.mxu0  ;;  %v908_v20 = vpop.f32.mrf.mxu1 }
 0x13e   : > { %v587_v21 = vadd.f32 %v864_v17, %v577_v18 }
 0x140   : > { %v865_v22 = vmul.f32 -1.442695, %v587_v21 }
 0x142   : > { %1022 = vpow2.f32 %v865_v22 }
 0x14f   : > { %v1023_v23 = vpop.eup %1022 }
 0x150   : > { %v591_v24 = vadd.f32 1.0, %v1023_v23 }
 0x152   : > { %1024 = vrcp.f32 %v591_v24 }
 0x15f   : > { %v1025_v26 = vpop.eup %1024 }
 0x160   : > { %v595_v27 = vmul.f32 %v1025_v26, %v594_v25 }
 0x162   : > { %v596_v28 = vadd.f32 %v595_v27, %v424_v9 }
 0x164   : > { %918 = vmatmul.mubr.msk.f32.vlgmr.msra.gmra.mxu0 %vm433_vm1, %v596_v28 }
 0x224   : > { %v677_v30 = vpop.f32.mrf.mxu0 }
 0x225   : > { %v678_v31 = vadd.f32 %v866_v29, %v677_v30 }
 0x226   : > { %v919_v32 = vpop.f32.mrf.mxu0 }
 0x227   : > { %681 = vst.msk [vmem:[%s418_s4] sm:$0xff] %vm433_vm1, %v678_v31 }
 0x228   : > { %1173 = shalt.err (!%p1170_p2)
}
 0x229   : > { %s1174_s2 = scalar_lea.hbm %s1491_s17, 128  ;;  %s1178_s8 = scalar_lea.hbm %s1541_s7, 256 }
 0x22a   : > { %p1175_p4 = scmp.ne.s32.totalorder %s1491_s17, %s1174_s2  ;;  %p1179_p7 = scmp.lt.s32.totalorder %s1491_s17, %s1541_s7 }
 0x22b   : > { %p1180_p6 = scmp.lt.s32.totalorder %s1178_s8, %s1174_s2 }
 0x22c   : > { %p1176_p1 = pnand %p1175_p4, %p1400_p5 }
 0x22d   : > { %p1181_p12 = por %p1180_p6, %p1179_p7 }
 0x22e   : > { %p1177_p8 = pneg %p1176_p1 }
 0x230   : > { %p1182_p0 = pnand %p1181_p12, %p1177_p8 }
 0x232   : > { %1185 = shalt.err (!%p1182_p0)
}
 0x233   : > { %936 = dma.vmem_to_hbm [thread:$0]  (%p1400_p5), %s697_s23, 128, %s1491_s17, %s683_s0  }
 0x234 PF: > { %s708_s16 = sand.u32 1, %s1232_s24   ;;  %p1566_p3 = scmp.ne.s32.totalorder %s1550_s10, 0 }
 0x235   : > { %p1567_p10 = scmp.ge.s32.totalorder %s1252_s29, 2  ;;  %s709_s12 = scalar_lea.sflag [#allocation4], %s708_s16 }
 0x237   : > { %p956_p11 = pnand %p1567_p10, %p1566_p3 }
 0x239   : > { %p957_p9 = pneg %p956_p11 }
 0x23b   : > { %1227 = dma.done.wait (%p957_p9), %s709_s12, 128  }
 0x23c   : > { %1229 = vsyncadd (%p957_p9), %s709_s12, 4294967168  ;;  %s27_s29 = sadd.s32 1, %s1252_s29   ;;  %s1568_s14 = sld [smem:[#allocation17_spill]] }
 0x23d   : > { %p24_p13 = scmp.ge.s32.totalorder %s27_s29, 4   ;;  %s1569_s24 = smov %s1236_s25 }
 0x23e   : > { %s1570_s25 = smov %s1240_s26  ;;  %s1571_s26 = smov %s1412_s21 }
 0x23f   : > { %s1572_s27 = smov %s1248_s28  ;;  %26 = sbr.rel (!%p24_p13) target bundleno = 14 (0xe), region = 124 }
 0x242   : > { %s1573_s28 = smov %s1568_s14 }
 0x244   :  { %714 = vsyncpa [#allocation3], 1 }
 0x245   :  { %716 = vsyncpa [#allocation3 + $0x1], 1 }
 0x246   :  { %717 = vsyncpa [#allocation6], 1 }
 0x247   :  { %719 = vsyncpa [#allocation6 + $0x1], 1 }
 0x248   :  { %720 = vsyncpa [#allocation9], 1 }
 0x249   :  { %721 = vsyncpa [#allocation4], 1 }
 0x24a   :  { %723 = vsyncpa [#allocation4 + $0x1], 1 }

</bundles_post_ra>
